<compile_context>
chip_gen: v7x
topology: tpu7x:2x2x1
jax: 0.10.0
libtpu: 0.0.40
codegen_flags: <defaults>
</compile_context>

<pallas_src>
import functools

import numpy as np
import jax
import jax.numpy as jnp
from jax.experimental import pallas as pl
from jax.experimental.pallas import tpu as pltpu

LANE = 128


def _round_up(x, m):
    return ((x + m - 1) // m) * m


def _make_conv_kernel(n_taps, K, Wp, lout_pad):
    """Builds the kernel body with the tap geometry baked in as constants."""

    def kernel(x_ref, w_ref, b_ref, o_ref, acc_ref):
        # x_ref  : (1, tci, lin_pad)   bf16 flattened padded input plane (+halo)
        # w_ref  : (K*K, tco, tci)     bf16 per-tap weight matrices
        # b_ref  : (tco, 1)            f32 bias
        # o_ref  : (1, tco, lout_pad)  lane-dense output tile
        # acc_ref: (tco, lout_pad)     f32 accumulator (lives across Cin tiles)
        ci = pl.program_id(2)

        @pl.when(ci == 0)
        def _init():
            acc_ref[...] = jnp.zeros_like(acc_ref)

        xv = x_ref[0]                      # (tci, lin_pad) — already in VMEM
        acc = acc_ref[...]
        for t in range(n_taps):            # unrolled: K*K static lane-offset taps
            kh, kw = divmod(t, K)
            d0 = kh * Wp + kw               # static flat shift of this tap
            x_t = xv[:, d0:d0 + lout_pad]   # on-chip shifted view (no HBM copy)
            acc = acc + jnp.dot(w_ref[t], x_t,
                                preferred_element_type=jnp.float32)
        acc_ref[...] = acc

        @pl.when(ci == pl.num_programs(2) - 1)
        def _finalize():
            o_ref[0] = jnp.maximum(acc + b_ref[...], 0.0).astype(o_ref.dtype)

    return kernel


@functools.partial(jax.jit, static_argnames=("kernel_size", "stride",
                                             "out_dtype", "compute_dtype"))
def conv_forward(x, weight, bias, kernel_size=3, stride=1, out_dtype=None,
                 compute_dtype=jnp.bfloat16):
    """Conv2d(k, s=1, pad=(k-1)//2, bias=True) + ReLU.  x: (B,C,H,W) -> (B,Cout,H,W)."""
    assert stride == 1, "only stride=1 implemented"
    assert kernel_size % 2 == 1, "only odd kernel sizes (PyTorch same-padding)"
    B, C, H, W = x.shape
    K = kernel_size
    pad = (K - 1) // 2
    Cout = weight.shape[0]
    assert weight.shape == (Cout, C, K, K)
    if out_dtype is None:
        out_dtype = x.dtype
    out_bytes = jnp.dtype(out_dtype).itemsize
    cbytes = jnp.dtype(compute_dtype).itemsize

    # ---- geometry ---------------------------------------------------------
    # Outputs are computed on the zero-padded (Hp x Wp) grid, flattened onto
    # the lane axis: every conv tap is then a *constant* flat shift of the
    # input plane.  Boundary rows/cols of the padded grid are garbage and are
    # cropped in the wrapper.
    Hp, Wp = H + 2 * pad, W + 2 * pad
    hw_p = Hp * Wp
    lout_pad = _round_up(hw_p, LANE)          # lane-dense output width
    halo = pad * Wp + pad                     # max |flat shift|
    lin_pad = _round_up(lout_pad + 2 * halo, LANE)
    # TODO(synk): very large spatial planes (> ~350x350) would additionally
    # need spatial (halo) tiling; not required for this module's use sites.

    # ---- channel tiling (multiples of 16 for bf16 packing), VMEM-budgeted --
    cin16 = _round_up(C, 16)
    if cin16 <= 128 or cin16 * lin_pad * cbytes * 2 <= 8 * 1024 * 1024:
        tci, cin_pad = cin16, cin16           # full Cin in one block
    else:
        tci = 128                             # tiled Cin must be a 128-multiple
        cin_pad = _round_up(C, tci)

    cout16 = _round_up(Cout, 16)

    def _co_cost(t):                          # acc scratch + double-buffered out
        return t * lout_pad * (4 + 2 * out_bytes)

    tco = cout16
    while _co_cost(tco) > 12 * 1024 * 1024 and tco > 16 and tco % 32 == 0:
        tco //= 2
    cout_pad = _round_up(Cout, tco)

    # ---- operand prep (fuses under jit: ~one pass over x / weight) ---------
    xp = jnp.pad(x.astype(compute_dtype),
                 ((0, 0), (0, 0), (pad, pad), (pad, pad)))      # (B,C,Hp,Wp)
    xf = xp.reshape(B, C, hw_p)
    xf = jnp.pad(xf, ((0, 0), (0, cin_pad - C),
                      (halo, lin_pad - halo - hw_p)))           # (B,cin_pad,lin_pad)

    # weights: (Cout,Cin,K,K) -> (K*K, cout_pad, cin_pad), tap t = kh*K + kw
    w9 = jnp.transpose(weight, (2, 3, 0, 1)).reshape(K * K, Cout, C)
    w9 = jnp.pad(w9.astype(compute_dtype),
                 ((0, 0), (0, cout_pad - Cout), (0, cin_pad - C)))
    b2 = jnp.pad(bias.astype(jnp.float32),
                 (0, cout_pad - Cout)).reshape(cout_pad, 1)

    n_co, n_ci = cout_pad // tco, cin_pad // tci
    grid = (B, n_co, n_ci)

    flops = 2 * B * cout_pad * cin_pad * K * K * lout_pad
    bytes_accessed = (xf.size * cbytes * n_co + w9.size * cbytes + b2.size * 4
                      + B * cout_pad * lout_pad * out_bytes)

    # VMEM working-set estimate (blocks + scratch + on-chip temps headroom).
    vmem_est = (2 * tci * lin_pad * cbytes        # double-buffered x tile
                + 2 * K * K * tco * tci * cbytes  # double-buffered weights
                + 2 * tco * 4                     # bias
                + 2 * tco * lout_pad * out_bytes  # double-buffered out tile
                + tco * lout_pad * 4              # f32 accumulator scratch
                + tci * lout_pad * cbytes         # headroom: shifted-tap temp
                + tco * lout_pad * 4)             # headroom: matmul result temp
    vmem_limit = int(min(48 * 1024 * 1024,        # v7x-safe (64 MiB physical)
                         max(32 * 1024 * 1024, int(vmem_est * 1.5))))

    kernel = _make_conv_kernel(K * K, K, Wp, lout_pad)

    out = pl.pallas_call(
        kernel,
        out_shape=jax.ShapeDtypeStruct((B, cout_pad, lout_pad), out_dtype),
        grid=grid,
        in_specs=[
            pl.BlockSpec((1, tci, lin_pad), lambda b, co, ci: (b, ci, 0)),
            # Weights/bias are small and batch-invariant; their default
            # double-buffer costs at most a couple of MiB (pl.Buffered(1)
            # could single-buffer them if VMEM ever gets tight).
            pl.BlockSpec((K * K, tco, tci), lambda b, co, ci: (0, co, ci)),
            pl.BlockSpec((tco, 1), lambda b, co, ci: (co, 0)),
        ],
        out_specs=pl.BlockSpec((1, tco, lout_pad), lambda b, co, ci: (b, co, 0)),
        scratch_shapes=[pltpu.VMEM((tco, lout_pad), jnp.float32)],
        compiler_params=pltpu.CompilerParams(
            dimension_semantics=("parallel", "parallel", "arbitrary"),
            vmem_limit_bytes=vmem_limit),
        cost_estimate=pl.CostEstimate(flops=flops, transcendentals=0,
                                      bytes_accessed=bytes_accessed),
    )(xf, w9, b2)

    # Crop channel/lane padding, un-flatten, drop padded-grid boundary
    # rows/cols (all fused into the same jit; no extra standalone kernels).
    out = out[:, :Cout, :hw_p].reshape(B, Cout, Hp, Wp)
    return out[:, :, pad:pad + H, pad:pad + W]


def _reference(x, weight, bias, kernel_size=3, compute_dtype=jnp.bfloat16):
    """Pure-JAX reference mirroring the PyTorch Conv module (bf16 MXU numerics)."""
    pad = (kernel_size - 1) // 2
    out = jax.lax.conv_general_dilated(
        x.astype(compute_dtype), weight.astype(compute_dtype),
        window_strides=(1, 1), padding=((pad, pad), (pad, pad)),
        dimension_numbers=("NCHW", "OIHW", "NCHW"),
        preferred_element_type=jnp.float32)
    out = out + bias.astype(jnp.float32)[None, :, None, None]
    return jnp.maximum(out, 0.0).astype(x.dtype)


if __name__ == "__main__":
    key = jax.random.PRNGKey(0)
    k_x, k_w, k_b = jax.random.split(key, 3)

    B, C, H, W = 2, 4, 16, 16
    Cout, K = 8, 3

    x = jax.random.normal(k_x, (B, C, H, W), dtype=jnp.float32)
    # Deterministic synthetic parameters (shapes match nn.Conv2d(C, Cout, 3)).
    weight = jax.random.normal(k_w, (Cout, C, K, K), dtype=jnp.float32) * 0.1
    bias = jax.random.normal(k_b, (Cout,), dtype=jnp.float32) * 0.1

    out = jax.block_until_ready(conv_forward(x, weight, bias, kernel_size=K))
    ref = jax.block_until_ready(_reference(x, weight, bias, kernel_size=K))

    assert out.shape == (B, Cout, H, W)
    assert np.allclose(np.asarray(out), np.asarray(ref), atol=2e-2, rtol=2e-2)

    print("KERNEL_OK")
</pallas_src>

<mosaic_0001>
module attributes {stable_mosaic.version = 11 : i64} {
  func.func @kernel(%arg0: i32, %arg1: i32, %arg2: i32, %arg3: memref<1x16x512xbf16, #tpu.memory_space<vmem>>, %arg4: memref<9x16x16xbf16, #tpu.memory_space<vmem>>, %arg5: memref<16x1xf32, #tpu.memory_space<vmem>>, %arg6: memref<1x16x384xf32, #tpu.memory_space<vmem>>, %arg7: memref<16x384xf32, #tpu.memory_space<vmem>>) attributes {dimension_semantics = [#tpu.dimension_semantics<parallel>, #tpu.dimension_semantics<parallel>, #tpu.dimension_semantics<arbitrary>], iteration_bounds = array<i64: 2, 1, 1>, scalar_prefetch = 0 : i64, scratch_operands = 1 : i64, tpu.core_type = #tpu.core_type<tc>, window_params = [{transform_indices = @transform_0, window_bounds = array<i64: 1, 16, 512>}, {transform_indices = @transform_1, window_bounds = array<i64: 9, 16, 16>}, {transform_indices = @transform_2, window_bounds = array<i64: 16, 1>}, {transform_indices = @transform_3, window_bounds = array<i64: 1, 16, 384>}]} {
    %c0_i32 = arith.constant 0 : i32
    %0 = arith.cmpi eq, %arg2, %c0_i32 : i32
    %1 = arith.extui %0 : i1 to i32
    %c0_i32_0 = arith.constant 0 : i32
    %2 = arith.cmpi ne, %1, %c0_i32_0 : i32
    scf.if %2 {
      %cst_36 = arith.constant 0.000000e+00 : f32
      %55 = vector.broadcast %cst_36 : f32 to vector<16x384xf32>
      %c0_37 = arith.constant 0 : index
      %c0_38 = arith.constant 0 : index
      %56 = vector.load %arg7[%c0_37, %c0_38] : memref<16x384xf32, #tpu.memory_space<vmem>>, vector<16x384xf32>
      tpu.vector_store %arg7[%c0_37, %c0_38], %55 {strides = array<i32>} : memref<16x384xf32, #tpu.memory_space<vmem>>, vector<16x384xf32>,
    } else {
    }
    %c0 = arith.constant 0 : index
    %c0_1 = arith.constant 0 : index
    %c0_2 = arith.constant 0 : index
    %3 = vector.load %arg3[%c0, %c0_1, %c0_2] : memref<1x16x512xbf16, #tpu.memory_space<vmem>>, vector<1x16x512xbf16>
    %4 = vector.shape_cast %3 : vector<1x16x512xbf16> to vector<16x512xbf16>
    %c0_3 = arith.constant 0 : index
    %c0_4 = arith.constant 0 : index
    %5 = vector.load %arg7[%c0_3, %c0_4] : memref<16x384xf32, #tpu.memory_space<vmem>>, vector<16x384xf32>
    %6 = vector.extract_strided_slice %4 {offsets = [0, 0], sizes = [16, 384], strides = [1, 1]} : vector<16x512xbf16> to vector<16x384xbf16>
    %c0_5 = arith.constant 0 : index
    %c0_6 = arith.constant 0 : index
    %c0_7 = arith.constant 0 : index
    %7 = vector.load %arg4[%c0_5, %c0_6, %c0_7] : memref<9x16x16xbf16, #tpu.memory_space<vmem>>, vector<1x16x16xbf16>
    %8 = vector.shape_cast %7 : vector<1x16x16xbf16> to vector<16x16xbf16>
    %cst = arith.constant dense<0.000000e+00> : vector<16x384xf32>
    %9 = tpu.matmul %8, %6, %cst {dimension_numbers = #tpu.dot_dimension_numbers<[1], [0], [0], [1], [0, 0, 1, 1], [], []>} : vector<16x16xbf16>, vector<16x384xbf16>, vector<16x384xf32> -> vector<16x384xf32>
    %10 = arith.addf %5, %9 : vector<16x384xf32>
    %11 = vector.extract_strided_slice %4 {offsets = [0, 1], sizes = [16, 384], strides = [1, 1]} : vector<16x512xbf16> to vector<16x384xbf16>
    %c1 = arith.constant 1 : index
    %c0_8 = arith.constant 0 : index
    %c0_9 = arith.constant 0 : index
    %12 = vector.load %arg4[%c1, %c0_8, %c0_9] : memref<9x16x16xbf16, #tpu.memory_space<vmem>>, vector<1x16x16xbf16>
    %13 = vector.shape_cast %12 : vector<1x16x16xbf16> to vector<16x16xbf16>
    %cst_10 = arith.constant dense<0.000000e+00> : vector<16x384xf32>
    %14 = tpu.matmul %13, %11, %cst_10 {dimension_numbers = #tpu.dot_dimension_numbers<[1], [0], [0], [1], [0, 0, 1, 1], [], []>} : vector<16x16xbf16>, vector<16x384xbf16>, vector<16x384xf32> -> vector<16x384xf32>
    %15 = arith.addf %10, %14 : vector<16x384xf32>
    %16 = vector.extract_strided_slice %4 {offsets = [0, 2], sizes = [16, 384], strides = [1, 1]} : vector<16x512xbf16> to vector<16x384xbf16>
    %c2 = arith.constant 2 : index
    %c0_11 = arith.constant 0 : index
    %c0_12 = arith.constant 0 : index
    %17 = vector.load %arg4[%c2, %c0_11, %c0_12] : memref<9x16x16xbf16, #tpu.memory_space<vmem>>, vector<1x16x16xbf16>
    %18 = vector.shape_cast %17 : vector<1x16x16xbf16> to vector<16x16xbf16>
    %cst_13 = arith.constant dense<0.000000e+00> : vector<16x384xf32>
    %19 = tpu.matmul %18, %16, %cst_13 {dimension_numbers = #tpu.dot_dimension_numbers<[1], [0], [0], [1], [0, 0, 1, 1], [], []>} : vector<16x16xbf16>, vector<16x384xbf16>, vector<16x384xf32> -> vector<16x384xf32>
    %20 = arith.addf %15, %19 : vector<16x384xf32>
    %21 = vector.extract_strided_slice %4 {offsets = [0, 18], sizes = [16, 384], strides = [1, 1]} : vector<16x512xbf16> to vector<16x384xbf16>
    %c3 = arith.constant 3 : index
    %c0_14 = arith.constant 0 : index
    %c0_15 = arith.constant 0 : index
    %22 = vector.load %arg4[%c3, %c0_14, %c0_15] : memref<9x16x16xbf16, #tpu.memory_space<vmem>>, vector<1x16x16xbf16>
    %23 = vector.shape_cast %22 : vector<1x16x16xbf16> to vector<16x16xbf16>
    %cst_16 = arith.constant dense<0.000000e+00> : vector<16x384xf32>
    %24 = tpu.matmul %23, %21, %cst_16 {dimension_numbers = #tpu.dot_dimension_numbers<[1], [0], [0], [1], [0, 0, 1, 1], [], []>} : vector<16x16xbf16>, vector<16x384xbf16>, vector<16x384xf32> -> vector<16x384xf32>
    %25 = arith.addf %20, %24 : vector<16x384xf32>
    %26 = vector.extract_strided_slice %4 {offsets = [0, 19], sizes = [16, 384], strides = [1, 1]} : vector<16x512xbf16> to vector<16x384xbf16>
    %c4 = arith.constant 4 : index
    %c0_17 = arith.constant 0 : index
    %c0_18 = arith.constant 0 : index
    %27 = vector.load %arg4[%c4, %c0_17, %c0_18] : memref<9x16x16xbf16, #tpu.memory_space<vmem>>, vector<1x16x16xbf16>
    %28 = vector.shape_cast %27 : vector<1x16x16xbf16> to vector<16x16xbf16>
    %cst_19 = arith.constant dense<0.000000e+00> : vector<16x384xf32>
    %29 = tpu.matmul %28, %26, %cst_19 {dimension_numbers = #tpu.dot_dimension_numbers<[1], [0], [0], [1], [0, 0, 1, 1], [], []>} : vector<16x16xbf16>, vector<16x384xbf16>, vector<16x384xf32> -> vector<16x384xf32>
    %30 = arith.addf %25, %29 : vector<16x384xf32>
    %31 = vector.extract_strided_slice %4 {offsets = [0, 20], sizes = [16, 384], strides = [1, 1]} : vector<16x512xbf16> to vector<16x384xbf16>
    %c5 = arith.constant 5 : index
    %c0_20 = arith.constant 0 : index
    %c0_21 = arith.constant 0 : index
    %32 = vector.load %arg4[%c5, %c0_20, %c0_21] : memref<9x16x16xbf16, #tpu.memory_space<vmem>>, vector<1x16x16xbf16>
    %33 = vector.shape_cast %32 : vector<1x16x16xbf16> to vector<16x16xbf16>
    %cst_22 = arith.constant dense<0.000000e+00> : vector<16x384xf32>
    %34 = tpu.matmul %33, %31, %cst_22 {dimension_numbers = #tpu.dot_dimension_numbers<[1], [0], [0], [1], [0, 0, 1, 1], [], []>} : vector<16x16xbf16>, vector<16x384xbf16>, vector<16x384xf32> -> vector<16x384xf32>
    %35 = arith.addf %30, %34 : vector<16x384xf32>
    %36 = vector.extract_strided_slice %4 {offsets = [0, 36], sizes = [16, 384], strides = [1, 1]} : vector<16x512xbf16> to vector<16x384xbf16>
    %c6 = arith.constant 6 : index
    %c0_23 = arith.constant 0 : index
    %c0_24 = arith.constant 0 : index
    %37 = vector.load %arg4[%c6, %c0_23, %c0_24] : memref<9x16x16xbf16, #tpu.memory_space<vmem>>, vector<1x16x16xbf16>
    %38 = vector.shape_cast %37 : vector<1x16x16xbf16> to vector<16x16xbf16>
    %cst_25 = arith.constant dense<0.000000e+00> : vector<16x384xf32>
    %39 = tpu.matmul %38, %36, %cst_25 {dimension_numbers = #tpu.dot_dimension_numbers<[1], [0], [0], [1], [0, 0, 1, 1], [], []>} : vector<16x16xbf16>, vector<16x384xbf16>, vector<16x384xf32> -> vector<16x384xf32>
    %40 = arith.addf %35, %39 : vector<16x384xf32>
    %41 = vector.extract_strided_slice %4 {offsets = [0, 37], sizes = [16, 384], strides = [1, 1]} : vector<16x512xbf16> to vector<16x384xbf16>
    %c7 = arith.constant 7 : index
    %c0_26 = arith.constant 0 : index
    %c0_27 = arith.constant 0 : index
    %42 = vector.load %arg4[%c7, %c0_26, %c0_27] : memref<9x16x16xbf16, #tpu.memory_space<vmem>>, vector<1x16x16xbf16>
    %43 = vector.shape_cast %42 : vector<1x16x16xbf16> to vector<16x16xbf16>
    %cst_28 = arith.constant dense<0.000000e+00> : vector<16x384xf32>
    %44 = tpu.matmul %43, %41, %cst_28 {dimension_numbers = #tpu.dot_dimension_numbers<[1], [0], [0], [1], [0, 0, 1, 1], [], []>} : vector<16x16xbf16>, vector<16x384xbf16>, vector<16x384xf32> -> vector<16x384xf32>
    %45 = arith.addf %40, %44 : vector<16x384xf32>
    %46 = vector.extract_strided_slice %4 {offsets = [0, 38], sizes = [16, 384], strides = [1, 1]} : vector<16x512xbf16> to vector<16x384xbf16>
    %c8 = arith.constant 8 : index
    %c0_29 = arith.constant 0 : index
    %c0_30 = arith.constant 0 : index
    %47 = vector.load %arg4[%c8, %c0_29, %c0_30] : memref<9x16x16xbf16, #tpu.memory_space<vmem>>, vector<1x16x16xbf16>
    %48 = vector.shape_cast %47 : vector<1x16x16xbf16> to vector<16x16xbf16>
    %cst_31 = arith.constant dense<0.000000e+00> : vector<16x384xf32>
    %49 = tpu.matmul %48, %46, %cst_31 {dimension_numbers = #tpu.dot_dimension_numbers<[1], [0], [0], [1], [0, 0, 1, 1], [], []>} : vector<16x16xbf16>, vector<16x384xbf16>, vector<16x384xf32> -> vector<16x384xf32>
    %50 = arith.addf %45, %49 : vector<16x384xf32>
    %c0_32 = arith.constant 0 : index
    %c0_33 = arith.constant 0 : index
    %51 = vector.load %arg7[%c0_32, %c0_33] : memref<16x384xf32, #tpu.memory_space<vmem>>, vector<16x384xf32>
    tpu.vector_store %arg7[%c0_32, %c0_33], %50 {strides = array<i32>} : memref<16x384xf32, #tpu.memory_space<vmem>>, vector<16x384xf32>,
    %c0_i32_34 = arith.constant 0 : i32
    %52 = arith.cmpi eq, %arg2, %c0_i32_34 : i32
    %53 = arith.extui %52 : i1 to i32
    %c0_i32_35 = arith.constant 0 : i32
    %54 = arith.cmpi ne, %53, %c0_i32_35 : i32
    scf.if %54 {
      %c0_36 = arith.constant 0 : index
      %c0_37 = arith.constant 0 : index
      %55 = vector.load %arg5[%c0_36, %c0_37] : memref<16x1xf32, #tpu.memory_space<vmem>>, vector<16x1xf32>
      %56 = vector.broadcast %55 : vector<16x1xf32> to vector<16x384xf32>
      %57 = arith.addf %50, %56 : vector<16x384xf32>
      %cst_38 = arith.constant 0.000000e+00 : f32
      %58 = vector.broadcast %cst_38 : f32 to vector<16x384xf32>
      %59 = arith.maximumf %57, %58 : vector<16x384xf32>
      %c0_39 = arith.constant 0 : index
      %c0_40 = arith.constant 0 : index
      %c0_41 = arith.constant 0 : index
      %60 = vector.load %arg6[%c0_39, %c0_40, %c0_41] : memref<1x16x384xf32, #tpu.memory_space<vmem>>, vector<1x16x384xf32>
      %61 = vector.shape_cast %60 : vector<1x16x384xf32> to vector<16x384xf32>
      %62 = vector.shape_cast %59 : vector<16x384xf32> to vector<1x16x384xf32>
      tpu.vector_store %arg6[%c0_39, %c0_40, %c0_41], %62 {strides = array<i32>} : memref<1x16x384xf32, #tpu.memory_space<vmem>>, vector<1x16x384xf32>,
    } else {
    }
    return
  }
  func.func @transform_0(%arg0: i32, %arg1: i32, %arg2: i32) -> (i32, i32, i32) {
    %c0_i32 = arith.constant 0 : i32
    %c0_i32_0 = arith.constant 0 : i32
    return %arg0, %arg2, %c0_i32 : i32, i32, i32
  }
  func.func @transform_1(%arg0: i32, %arg1: i32, %arg2: i32) -> (i32, i32, i32) {
    %c0_i32 = arith.constant 0 : i32
    %c0_i32_0 = arith.constant 0 : i32
    return %c0_i32, %arg1, %arg2 : i32, i32, i32
  }
  func.func @transform_2(%arg0: i32, %arg1: i32, %arg2: i32) -> (i32, i32) {
    %c0_i32 = arith.constant 0 : i32
    %c0_i32_0 = arith.constant 0 : i32
    return %arg1, %c0_i32 : i32, i32
  }
  func.func @transform_3(%arg0: i32, %arg1: i32, %arg2: i32) -> (i32, i32, i32) {
    %c0_i32 = arith.constant 0 : i32
    %c0_i32_0 = arith.constant 0 : i32
    return %arg0, %arg1, %c0_i32 : i32, i32, i32
  }
}

</mosaic_0001>

<bundles_post_ra>
// kernel: conv_forward.1
= control target key start
LH: loop header
LB: loop body
LE: loop exit
PB: predicated region body
PF: predicated region fallthrough
CT: control target
= control target key end

     0   :  { %s1789_s12 = smov 0   ;;  %s1791_s13 = smov 0   ;;  %s1939_s0 = inlined_call_operand.vmem [shape: bf16[2,16,512], index: 0, kind: input, shape index: {}]   ;;  %s1940_s1 = inlined_call_operand.vmem [shape: bf16[9,16,16], index: 1, kind: input, shape index: {}]   ;;  %s1941_s2 = inlined_call_operand.vmem [shape: f32[16,1], index: 2, kind: input, shape index: {}]   ;;  %s1942_s3 = inlined_call_operand.vmem [shape: f32[2,16,384], index: 3, kind: output, shape index: {}]  }
   0x1   :  { %s1793_s14 = smov 0  }
   0x2 LB: > { %s32_s15 = sadd.s32 1, %s1752_s13  ;;  %p1523_p0 = scmp.ge.s32.totalorder %s1756_s14, 1  ;;  %s1756_s14 = sphi %s1793_s14, %s13_s14   ;;  %s1752_s13 = sphi %s1791_s13, %s1944_s13   ;;  %s1748_s12 = sphi %s1789_s12, %s1943_s12  }
   0x3   : > { %p34_p1 = scmp.ge.s32.totalorder %s32_s15, 2  ;;  %p193_p2 = scmp.lt.s32.totalorder %s1756_s14, 3 }
   0x5   : > { %s1946_s15 = smov (%p34_p1, %s32_s15), 0  ;;  %p194_p3 = pnand %p1523_p0, %p193_p2 }
   0x6   : > { %p241_p4 = scmp.lt.s32.totalorder (!%p194_p3), %s1748_s12, 1  ;;  %v1758_v0 = vmov (!%p194_p3), 0   ;;  %v1759_v1 = vmov (!%p194_p3), 0.0   ;;  %vm1760_vm0 = vmmov (!%p194_p3), 0   ;;  %v1725_v3 = vld [vmem:[%s1940_s1] sm:$0xff] (!%p194_p3)   ;;  %s1761_s22 = smov (!%p194_p3), 127  }
   0x7   : > { %197 = sbr.rel (%p194_p3) target bundleno = 446 (0x1be), region = 32  ;;  %357 = vmatprep.mubr.bf16.mxu0 (!%p194_p3), %v1758_v0  ;;  %1717 = vset.pattern.permute.xlu0 (!%p194_p3), %v1758_v0  ;;  %vm321_vm1 = vcmask (!%p194_p3), 130048   ;;  %s1762_s23 = smov (!%p194_p3), 126   ;;  %v1355_v7 = vld [vmem:[%s1941_s2] sm:$0xff] (!%p194_p3)  ;;  %v1356_v8 = vld [vmem:[%s1941_s2 + $0x8] sm:$0xff] (!%p194_p3)  ;;  %vm434_vm2 = vcmask (!%p194_p3), 1039360  }
   0x8   : > { %1718 = vset.pattern.permute.xlu1 (!%p194_p3), %v1758_v0  ;;  %1595 = vmatprep.subr.bf16.mxu1 (!%p194_p3), %v1759_v1  ;;  %s1763_s24 = smov (!%p194_p3), 110   ;;  %s1764_s25 = smov (!%p194_p3), 109   ;;  %vm550_vm3 = vcmask (!%p194_p3), 1031168   ;;  %v1726_v15 = vld [vmem:[%s1940_s1 + $0x8] sm:$0xff] (!%p194_p3)   ;;  %vm666_vm4 = vcmask (!%p194_p3), 900096   ;;  %v1727_v26 = vld [vmem:[%s1940_s1 + $0x10] sm:$0xff] (!%p194_p3)  }
   0x9   : > { %1597 = vmatprep.mubr.msk.bf16.mxu1 (!%p194_p3), %vm1760_vm0, %v1759_v1  ;;  %s1765_s26 = smov (!%p194_p3), 108   ;;  %s1766_s27 = smov (!%p194_p3), 92   ;;  %vm782_vm5 = vcmask (!%p194_p3), 891904   ;;  %v1728_v37 = vld [vmem:[%s1940_s1 + $0x18] sm:$0xff] (!%p194_p3)   ;;  %vm898_vm6 = vcmask (!%p194_p3), 883712   ;;  %v1729_v47 = vld [vmem:[%s1940_s1 + $0x20] sm:$0xff] (!%p194_p3)  }
   0xa   : > { %s1767_s28 = smov (!%p194_p3), 91   ;;  %s1768_s29 = smov (!%p194_p3), 90   ;;  %vm1014_vm7 = vcmask (!%p194_p3), 752640   ;;  %v1730_v54 = vld [vmem:[%s1940_s1 + $0x28] sm:$0xff] (!%p194_p3)   ;;  %vm1130_vm8 = vcmask (!%p194_p3), 744448   ;;  %v1731_v61 = vld [vmem:[%s1940_s1 + $0x30] sm:$0xff] (!%p194_p3)  }
   0xb   : > { %vm1246_vm9 = vcmask (!%p194_p3), 736256  }
   0xe   : > { %s1948_s12 = smov (!%p241_p4, %s1748_s12), 1 }
   0xf   : > { %s1576_s16 = sshll.u32 %s1948_s12, 5 }
  0x10   : > { %s249_s19 = scalar_lea.vmem %s1939_s0, %s1576_s16 }
  0x11   : > { %v1719_v2 = vld [vmem:[%s249_s19 + $0x4] ss:$16 sps:$4 sm:$0xff]   ;;  %v1721_v4 = vld [vmem:[%s249_s19] ss:$16 sps:$4 sm:$0xff]   ;;  %v1722_v5 = vld [vmem:[%s249_s19 + $0x8] ss:$16 sps:$4 sm:$0xff]  }
  0x12   : > { %428 = vrot.lane.b32.xlu0 %v1719_v2, %s1761_s22  ;;  %325 = vmatprep.subr.bf16.mxu0 %v1719_v2  ;;  %v1724_v6 = vld [vmem:[%s249_s19 + $0xc] ss:$16 sps:$4 sm:$0xff]  }
  0x13   : > { %426 = vrot.lane.b32.xlu1 %v1721_v4, %s1761_s22  ;;  %326 = vmatpush1.bf16.msra.mxu0 %v1721_v4 }
  0x14   : > { %1596 = vmatpush3.bf16.msra.mxu1 %v1722_v5 }
  0x15   : > { %1601 = vmatprep.subr.bf16.mxu1 %v1759_v1 }
  0x16   : > { %430 = vrot.lane.b32.xlu0 %v1722_v5, %s1761_s22  ;;  %1531 = vmatmul.mubr.msk.bf16.vlgmr.msra.gmra.mrb[0].mxu0 %vm321_vm1, %v1725_v3 }
  0x17   : > { %544 = vrot.lane.b32.xlu1 %v1719_v2, %s1762_s23  ;;  %476 = vmatprep.mubr.bf16.mxu0 %v1758_v0 }
  0x18   : > { %1598 = vmatmul.mubr.msk.bf16.vlgmr.msra.gmra.mrb[0].mxu1 %vm321_vm1, %v1725_v3 }
  0x19   : > { %1603 = vmatprep.mubr.msk.bf16.mxu1 %vm1760_vm0, %v1759_v1 }
  0x1a   : > { %546 = vrot.lane.b32.xlu0 %v1722_v5, %s1762_s23 }
  0x1b   : > { %542 = vrot.lane.b32.xlu1 %v1721_v4, %s1762_s23 }
  0x1e   : > { %660 = vrot.lane.b32.xlu0 %v1719_v2, %s1763_s24 }
  0x1f   : > { %662 = vrot.lane.b32.xlu1 %v1722_v5, %s1763_s24 }
  0x22   : > { %658 = vrot.lane.b32.xlu0 %v1721_v4, %s1763_s24 }
  0x23   : > { %432 = vrot.lane.b32.xlu1 %v1724_v6, %s1761_s22 }
  0x26   : > { %548 = vrot.lane.b32.xlu0 %v1724_v6, %s1762_s23 }
  0x27   : > { %776 = vrot.lane.b32.xlu1 %v1719_v2, %s1764_s25 }
  0x2a   : > { %778 = vrot.lane.b32.xlu0 %v1722_v5, %s1764_s25 }
  0x2b   : > { %774 = vrot.lane.b32.xlu1 %v1721_v4, %s1764_s25 }
  0x2e   : > { %664 = vrot.lane.b32.xlu0 %v1724_v6, %s1763_s24 }
  0x2f   : > { %892 = vrot.lane.b32.xlu1 %v1719_v2, %s1765_s26 }
  0x32   : > { %894 = vrot.lane.b32.xlu0 %v1722_v5, %s1765_s26 }
  0x33   : > { %890 = vrot.lane.b32.xlu1 %v1721_v4, %s1765_s26 }
  0x36   : > { %780 = vrot.lane.b32.xlu0 %v1724_v6, %s1764_s25 }
  0x37   : > { %896 = vrot.lane.b32.xlu1 %v1724_v6, %s1765_s26 }
  0x3a   : > { %1008 = vrot.lane.b32.xlu0 %v1719_v2, %s1766_s27 }
  0x3b   : > { %1010 = vrot.lane.b32.xlu1 %v1722_v5, %s1766_s27 }
  0x3e   : > { %1006 = vrot.lane.b32.xlu0 %v1721_v4, %s1766_s27 }
  0x3f   : > { %1012 = vrot.lane.b32.xlu1 %v1724_v6, %s1766_s27  ;;  %s1681_s27 = smul.u32 48, %s1948_s12 }
  0x41   : > { %s275_s30 = scalar_lea.vmem %s1942_s3, %s1681_s27 }
  0x42   : > { %1124 = vrot.lane.b32.xlu0 %v1719_v2, %s1767_s28 }
  0x43   : > { %1126 = vrot.lane.b32.xlu1 %v1722_v5, %s1767_s28 }
  0x46   : > { %1122 = vrot.lane.b32.xlu0 %v1721_v4, %s1767_s28 }
  0x47   : > { %1128 = vrot.lane.b32.xlu1 %v1724_v6, %s1767_s28 }
  0x4a   : > { %1240 = vrot.lane.b32.xlu0 %v1719_v2, %s1768_s29 }
  0x4b   : > { %1242 = vrot.lane.b32.xlu1 %v1722_v5, %s1768_s29 }
  0x4e   : > { %1244 = vrot.lane.b32.xlu0 %v1724_v6, %s1768_s29 }
  0x4f   : > { %1238 = vrot.lane.b32.xlu1 %v1721_v4, %s1768_s29  ;;  %v1732_v4 = vld [vmem:[%s1940_s1 + $0x38] sm:$0xff]  }
  0x52   : > { %1359 = vperm.xlu0 %1717, %v1355_v7  }
  0x53   : > { %1364 = vperm.xlu1 %1718, %v1356_v8   ;;  %v1733_v8 = vld [vmem:[%s1940_s1 + $0x40] sm:$0xff]  }
  0x84   : > { %v429_v9 = vpop.permute.xlu0 %428 }
  0x85   : > { %v427_v10 = vpop.permute.xlu1 %426 }
  0x86   : > { %v435_v14 = vsel %vm434_vm2, %v427_v10, %v429_v9 }
  0x88   : > { %v431_v11 = vpop.permute.xlu0 %430 }
  0x89   : > { %v545_v12 = vpop.permute.xlu1 %544  ;;  %v436_v13 = vsel %vm434_vm2, %v429_v9, %v431_v11 }
  0x8a   : > { %444 = vmatprep.subr.bf16.mxu0 %v436_v13 }
  0x8b   : > { %445 = vmatpush1.bf16.msra.mxu0 %v435_v14 }
  0x8c   : > { %v547_v16 = vpop.permute.xlu0 %546 }
  0x8d   : > { %v543_v17 = vpop.permute.xlu1 %542  ;;  %v552_v18 = vsel %vm550_vm3, %v545_v12, %v547_v16 }
  0x8e   : > { %v551_v19 = vsel %vm550_vm3, %v543_v17, %v545_v12  ;;  %1537 = vmatmul.mubr.msk.bf16.vlgmr.msra.gmra.mrb[0].mxu0 %vm321_vm1, %v1726_v15  ;;  %560 = vmatprep.subr.bf16.mxu0 %v552_v18 }
  0x8f   : > { %561 = vmatpush1.bf16.msra.mxu0 %v551_v19  ;;  %592 = vmatprep.mubr.bf16.mxu0 %v1758_v0 }
  0x90   : > { %v661_v20 = vpop.permute.xlu0 %660 }
  0x91   : > { %v663_v21 = vpop.permute.xlu1 %662 }
  0x92   : > { %v668_v22 = vsel %vm666_vm4, %v661_v20, %v663_v21 }
  0x93   : > { %676 = vmatprep.subr.bf16.mxu0 %v668_v22 }
  0x94   : > { %v659_v23 = vpop.permute.xlu0 %658 }
  0x95   : > { %v433_v24 = vpop.permute.xlu1 %432  ;;  %v667_v27 = vsel %vm666_vm4, %v659_v23, %v661_v20 }
  0x96   : > { %v437_v25 = vsel %vm434_vm2, %v431_v11, %v433_v24 }
  0x97   : > { %1602 = vmatpush3.bf16.msra.mxu1 %v437_v25 }
  0x98   : > { %v549_v28 = vpop.permute.xlu0 %548  ;;  %1607 = vmatprep.subr.bf16.mxu1 %v1759_v1 }
  0x99   : > { %v553_v29 = vsel %vm550_vm3, %v547_v16, %v549_v28  ;;  %v777_v30 = vpop.permute.xlu1 %776 }
  0x9a   : > { %1604 = vmatmul.mubr.msk.bf16.vlgmr.msra.gmra.mrb[4].mxu1 %vm321_vm1, %v1726_v15  ;;  %1542 = vmatmul.mubr.msk.bf16.vlgmr.msra.gmra.mrb[0].mxu0 %vm321_vm1, %v1727_v26 }
  0x9b   : > { %1608 = vmatpush3.bf16.msra.mxu1 %v553_v29  ;;  %677 = vmatpush1.bf16.msra.mxu0 %v667_v27 }
  0x9c   : > { %v779_v31 = vpop.permute.xlu0 %778  ;;  %1609 = vmatprep.mubr.msk.bf16.mxu1 %vm1760_vm0, %v1759_v1  ;;  %1613 = vmatprep.subr.bf16.mxu1 %v1759_v1 }
  0x9d   : > { %708 = vmatprep.mubr.bf16.mxu0 %v1758_v0  ;;  %v775_v32 = vpop.permute.xlu1 %774  ;;  %v784_v33 = vsel %vm782_vm5, %v777_v30, %v779_v31 }
  0x9e   : > { %792 = vmatprep.subr.bf16.mxu0 %v784_v33  ;;  %v783_v39 = vsel %vm782_vm5, %v775_v32, %v777_v30 }
  0xa0   : > { %v665_v34 = vpop.permute.xlu0 %664 }
  0xa1   : > { %v669_v35 = vsel %vm666_vm4, %v663_v21, %v665_v34  ;;  %v893_v36 = vpop.permute.xlu1 %892 }
  0xa2   : > { %1610 = vmatmul.mubr.msk.bf16.vlgmr.msra.gmra.mrb[8].mxu1 %vm321_vm1, %v1727_v26 }
  0xa3   : > { %1614 = vmatpush3.bf16.msra.mxu1 %v669_v35  ;;  %1615 = vmatprep.mubr.msk.bf16.mxu1 %vm1760_vm0, %v1759_v1 }
  0xa4   : > { %v895_v38 = vpop.permute.xlu0 %894  ;;  %1619 = vmatprep.subr.bf16.mxu1 %v1759_v1 }
  0xa5   : > { %v891_v40 = vpop.permute.xlu1 %890  ;;  %v900_v41 = vsel %vm898_vm6, %v893_v36, %v895_v38 }
  0xa6   : > { %1547 = vmatmul.mubr.msk.bf16.vlgmr.msra.gmra.mrb[0].mxu0 %vm321_vm1, %v1728_v37  ;;  %v899_v48 = vsel %vm898_vm6, %v891_v40, %v893_v36 }
  0xa7   : > { %793 = vmatpush1.bf16.msra.mxu0 %v783_v39  ;;  %824 = vmatprep.mubr.bf16.mxu0 %v1758_v0 }
  0xa8   : > { %v781_v42 = vpop.permute.xlu0 %780  ;;  %908 = vmatprep.subr.bf16.mxu0 %v900_v41 }
  0xa9   : > { %v785_v43 = vsel %vm782_vm5, %v779_v31, %v781_v42  ;;  %v897_v44 = vpop.permute.xlu1 %896 }
  0xaa   : > { %1616 = vmatmul.mubr.msk.bf16.vlgmr.msra.gmra.mrb[12].mxu1 %vm321_vm1, %v1728_v37  ;;  %v901_v49 = vsel %vm898_vm6, %v895_v38, %v897_v44 }
  0xab   : > { %1620 = vmatpush3.bf16.msra.mxu1 %v785_v43  ;;  %1621 = vmatprep.mubr.msk.bf16.mxu1 %vm1760_vm0, %v1759_v1 }
  0xac   : > { %1625 = vmatprep.subr.bf16.mxu1 %v1759_v1  ;;  %v1009_v45 = vpop.permute.xlu0 %1008 }
  0xad   : > { %v1011_v46 = vpop.permute.xlu1 %1010 }
  0xae   : > { %v1016_v52 = vsel %vm1014_vm7, %v1009_v45, %v1011_v46 }
  0xb0   : > { %v1007_v50 = vpop.permute.xlu0 %1006 }
  0xb1   : > { %v1013_v51 = vpop.permute.xlu1 %1012  ;;  %v1015_v58 = vsel %vm1014_vm7, %v1007_v50, %v1009_v45 }
  0xb2   : > { %1622 = vmatmul.mubr.msk.bf16.vlgmr.msra.gmra.mrb[16].mxu1 %vm321_vm1, %v1729_v47  ;;  %1552 = vmatmul.mubr.msk.bf16.vlgmr.msra.gmra.mrb[0].mxu0 %vm321_vm1, %v1729_v47  ;;  %v1017_v56 = vsel %vm1014_vm7, %v1011_v46, %v1013_v51 }
  0xb3   : > { %1626 = vmatpush3.bf16.msra.mxu1 %v901_v49  ;;  %909 = vmatpush1.bf16.msra.mxu0 %v899_v48 }
  0xb4   : > { %1627 = vmatprep.mubr.msk.bf16.mxu1 %vm1760_vm0, %v1759_v1  ;;  %940 = vmatprep.mubr.bf16.mxu0 %v1758_v0  ;;  %v1125_v53 = vpop.permute.xlu0 %1124 }
  0xb5   : > { %1631 = vmatprep.subr.bf16.mxu1 %v1759_v1  ;;  %1024 = vmatprep.subr.bf16.mxu0 %v1016_v52  ;;  %v1127_v55 = vpop.permute.xlu1 %1126 }
  0xb6   : > { %v1132_v60 = vsel %vm1130_vm8, %v1125_v53, %v1127_v55 }
  0xb8   : > { %v1123_v57 = vpop.permute.xlu0 %1122 }
  0xb9   : > { %v1129_v59 = vpop.permute.xlu1 %1128  ;;  %v1131_v5 = vsel %vm1130_vm8, %v1123_v57, %v1125_v53 }
  0xba   : > { %1628 = vmatmul.mubr.msk.bf16.vlgmr.msra.gmra.mrb[20].mxu1 %vm321_vm1, %v1730_v54  ;;  %v1133_v63 = vsel %vm1130_vm8, %v1127_v55, %v1129_v59 }
  0xbb   : > { %1632 = vmatpush3.bf16.msra.mxu1 %v1017_v56  ;;  %1633 = vmatprep.mubr.msk.bf16.mxu1 %vm1760_vm0, %v1759_v1 }
  0xbc   : > { %1637 = vmatprep.subr.bf16.mxu1 %v1759_v1  ;;  %v1241_v62 = vpop.permute.xlu0 %1240 }
  0xbd   : > { %v1243_v3 = vpop.permute.xlu1 %1242 }
  0xbe   : > { %1557 = vmatmul.mubr.msk.bf16.vlgmr.msra.gmra.mrb[0].mxu0 %vm321_vm1, %v1730_v54  ;;  %v1248_v7 = vsel %vm1246_vm9, %v1241_v62, %v1243_v3 }
  0xbf   : > { %1025 = vmatpush1.bf16.msra.mxu0 %v1015_v58  ;;  %1056 = vmatprep.mubr.bf16.mxu0 %v1758_v0 }
  0xc0   : > { %1140 = vmatprep.subr.bf16.mxu0 %v1132_v60  ;;  %v1245_v2 = vpop.permute.xlu0 %1244 }
  0xc1   : > { %v1249_v6 = vsel %vm1246_vm9, %v1243_v3, %v1245_v2  ;;  %v1239_v9 = vpop.permute.xlu1 %1238 }
  0xc2   : > { %1634 = vmatmul.mubr.msk.bf16.vlgmr.msra.gmra.mrb[24].mxu1 %vm321_vm1, %v1731_v61  ;;  %v1247_v10 = vsel %vm1246_vm9, %v1239_v9, %v1241_v62 }
  0xc3   : > { %1638 = vmatpush3.bf16.msra.mxu1 %v1133_v63  ;;  %1639 = vmatprep.mubr.msk.bf16.mxu1 %vm1760_vm0, %v1759_v1 }
  0xc4   : > { %1643 = vmatprep.subr.bf16.mxu1 %v1759_v1 }
  0xca   : > { %1640 = vmatmul.mubr.msk.bf16.vlgmr.msra.gmra.mrb[28].mxu1 %vm321_vm1, %v1732_v4  ;;  %1562 = vmatmul.mubr.msk.bf16.vlgmr.msra.gmra.mrb[0].mxu0 %vm321_vm1, %v1731_v61 }
  0xcb   : > { %1644 = vmatpush3.bf16.msra.mxu1 %v1249_v6  ;;  %1141 = vmatpush1.bf16.msra.mxu0 %v1131_v5 }
  0xcc   : > { %1645 = vmatprep.mubr.msk.bf16.mxu1 %vm1760_vm0, %v1759_v1  ;;  %1172 = vmatprep.mubr.bf16.mxu0 %v1758_v0 }
  0xcd   : > { %1256 = vmatprep.subr.bf16.mxu0 %v1248_v7 }
  0xd1   : > { %v1360_v56 = vpop.permute.xlu0 %1359 }
  0xd2   : > { %1646 = vmatmul.mubr.msk.bf16.vlgmr.msra.gmra.mrb[32].mxu1 %vm321_vm1, %v1733_v8  ;;  %v1365_v60 = vpop.permute.xlu1 %1364 }
  0xd6   : > { %1567 = vmatmul.mubr.msk.bf16.vlgmr.msra.gmra.mrb[0].mxu0 %vm321_vm1, %v1732_v4 }
  0xd7   : > { %1257 = vmatpush1.bf16.msra.mxu0 %v1247_v10  ;;  %1288 = vmatprep.mubr.bf16.mxu0 %v1758_v0 }
  0xe2   : > { %1572 = vmatmul.mubr.msk.bf16.vlgmr.msra.gmra.mrb[0].mxu0 %vm321_vm1, %v1733_v8 }
  0xeb   : > { %v402_v1 = vpop.f32.mrb[0].mxu1 }
  0xec   : > { %v1599_v11 = vpop.f32.mrb[1].mxu1 }
  0xed   : > { %v405_v12 = vpop.f32.mrb[2].mxu1 }
  0xee   : > { %v1600_v13 = vpop.f32.mrb[3].mxu1 }
 0x16d   : > { %v521_v14 = vpop.f32.mrb[4].mxu1 }
 0x16e   : > { %v530_v15 = vadd.f32 %v521_v14, %v402_v1  ;;  %v1605_v16 = vpop.f32.mrb[5].mxu1 }
 0x16f   : > { %v524_v17 = vpop.f32.mrb[6].mxu1 }
 0x170   : > { %v533_v18 = vadd.f32 %v524_v17, %v405_v12  ;;  %v1606_v19 = vpop.f32.mrb[7].mxu1 }
 0x175   : > { %v637_v20 = vpop.f32.mrb[8].mxu1 }
 0x176   : > { %v646_v21 = vadd.f32 %v637_v20, %v530_v15  ;;  %v1611_v22 = vpop.f32.mrb[9].mxu1 }
 0x177   : > { %v640_v23 = vpop.f32.mrb[10].mxu1 }
 0x178   : > { %v649_v24 = vadd.f32 %v640_v23, %v533_v18  ;;  %v1612_v25 = vpop.f32.mrb[11].mxu1 }
 0x17d   : > { %v753_v26 = vpop.f32.mrb[12].mxu1 }
 0x17e   : > { %v762_v0 = vadd.f32 %v753_v26, %v646_v21  ;;  %v1617_v27 = vpop.f32.mrb[13].mxu1 }
 0x17f   : > { %v756_v28 = vpop.f32.mrb[14].mxu1 }
 0x180   : > { %v765_v29 = vadd.f32 %v756_v28, %v649_v24  ;;  %v1618_v30 = vpop.f32.mrb[15].mxu1 }
 0x185   : > { %v869_v31 = vpop.f32.mrb[16].mxu1 }
 0x186   : > { %v878_v32 = vadd.f32 %v869_v31, %v762_v0  ;;  %v1623_v33 = vpop.f32.mrb[17].mxu1 }
 0x187   : > { %v872_v34 = vpop.f32.mrb[18].mxu1 }
 0x188   : > { %v881_v35 = vadd.f32 %v872_v34, %v765_v29  ;;  %v1624_v36 = vpop.f32.mrb[19].mxu1 }
 0x18d   : > { %v985_v37 = vpop.f32.mrb[20].mxu1 }
 0x18e   : > { %v994_v38 = vadd.f32 %v985_v37, %v878_v32  ;;  %v1629_v39 = vpop.f32.mrb[21].mxu1 }
 0x18f   : > { %v988_v40 = vpop.f32.mrb[22].mxu1 }
 0x190   : > { %v997_v41 = vadd.f32 %v988_v40, %v881_v35  ;;  %v1630_v42 = vpop.f32.mrb[23].mxu1 }
 0x195   : > { %v1101_v43 = vpop.f32.mrb[24].mxu1 }
 0x196   : > { %v1110_v44 = vadd.f32 %v1101_v43, %v994_v38  ;;  %v1635_v45 = vpop.f32.mrb[25].mxu1 }
 0x197   : > { %v1104_v46 = vpop.f32.mrb[26].mxu1 }
 0x198   : > { %v1113_v47 = vadd.f32 %v1104_v46, %v997_v41  ;;  %v1636_v48 = vpop.f32.mrb[27].mxu1 }
 0x19d   : > { %v1217_v49 = vpop.f32.mrb[28].mxu1 }
 0x19e   : > { %v1226_v50 = vadd.f32 %v1217_v49, %v1110_v44  ;;  %v1641_v51 = vpop.f32.mrb[29].mxu1 }
 0x19f   : > { %v1220_v52 = vpop.f32.mrb[30].mxu1 }
 0x1a0   : > { %v1229_v53 = vadd.f32 %v1220_v52, %v1113_v47  ;;  %v1642_v54 = vpop.f32.mrb[31].mxu1 }
 0x1a5   : > { %v1333_v55 = vpop.f32.mrb[32].mxu1 }
 0x1a6   : > { %v1342_v57 = vadd.f32 %v1333_v55, %v1226_v50  ;;  %v1647_v58 = vpop.f32.mrb[33].mxu1 }
 0x1a7   : > { %v1336_v59 = vpop.f32.mrb[34].mxu1 }
 0x1a8   : > { %v1369_v61 = vadd.f32 %v1360_v56, %v1342_v57  ;;  %v1345_v62 = vadd.f32 %v1336_v59, %v1229_v53  ;;  %v1648_v63 = vpop.f32.mrb[35].mxu1 }
 0x1aa   : > { %v1375_v2 = vmax.f32 %v1369_v61, 0.0  ;;  %v1372_v3 = vadd.f32 %v1365_v60, %v1345_v62 }
 0x1ac   : > { %1381 = vst [vmem:[%s275_s30 + $0x10] sm:$0xff] %v1375_v2  ;;  %v1378_v4 = vmax.f32 %v1372_v3, 0.0 }
 0x1ae   : > { %1384 = vst [vmem:[%s275_s30 + $0x28] sm:$0xff] %v1378_v4 }
 0x1b5   : > { %v1290_v5 = vpop.f32.mrb[0].mxu0 }
 0x1b6   : > { %v1367_v6 = vadd.f32 %v1360_v56, %v1290_v5  ;;  %v1292_v7 = vpop.f32.mrb[1].mxu0 }
 0x1b7   : > { %v1368_v8 = vadd.f32 %v1360_v56, %v1292_v7  ;;  %v1294_v9 = vpop.f32.mrb[2].mxu0 }
 0x1b8   : > { %v1373_v10 = vmax.f32 %v1367_v6, 0.0  ;;  %v1370_v1 = vadd.f32 %v1365_v60, %v1294_v9  ;;  %v1296_v11 = vpop.f32.mrb[3].mxu0 }
 0x1b9   : > { %v1374_v12 = vmax.f32 %v1368_v8, 0.0  ;;  %v1371_v13 = vadd.f32 %v1365_v60, %v1296_v11 }
 0x1ba   : > { %1379 = vst [vmem:[%s275_s30] sm:$0xff] %v1373_v10  ;;  %v1376_v14 = vmax.f32 %v1370_v1, 0.0 }
 0x1bb   : > { %1380 = vst [vmem:[%s275_s30 + $0x8] sm:$0xff] %v1374_v12  ;;  %v1377_v15 = vmax.f32 %v1371_v13, 0.0 }
 0x1bc   : > { %1382 = vst [vmem:[%s275_s30 + $0x18] sm:$0xff] %v1376_v14 }
 0x1bd   : > { %1383 = vst [vmem:[%s275_s30 + $0x20] sm:$0xff] %v1377_v15 }
 0x1be PF: > { %s13_s14 = sadd.s32 1, %s1756_s14   ;;  %s1943_s12 = smov %s1752_s13 }
 0x1bf   : > { %p10_p5 = scmp.ge.s32.totalorder %s13_s14, 4   ;;  %s1944_s13 = smov %s1946_s15 }
 0x1c1   :  { %12 = sbr.rel (!%p10_p5) target bundleno = 2 (0x2), region = 84 }

</bundles_post_ra>
